<compile_context>
chip_gen: v6e
topology: v6e:2x2x1
jax: 0.10.0
libtpu: 0.0.40
codegen_flags: <defaults>
</compile_context>

<pallas_src>
import jax
import jax.numpy as jnp
from jax.experimental import pallas as pl
from jax.experimental.pallas import tpu as pltpu

IN_DIM = 512
HID_DIM = 300
OUT_DIM = 300
HID_PAD = 384   # 3 * 128 lanes
OUT_PAD = 384   # 3 * 128 lanes


def _round_up(x, m):
    return (x + m - 1) // m * m


def projector_kernel(x_ref, w1_ref, b1_ref, w2_ref, b2_ref, o_ref):
    # x_ref:  (bt, 512)  f32      w1_ref: (512, 384) bf16   b1_ref: (1, 384) f32
    # w2_ref: (384, 384) bf16     b2_ref: (1, 384)  f32     o_ref:  (bt, 384) f32
    x = x_ref[...].astype(jnp.bfloat16)          # cast in-kernel (VPU has slack)
    h = jnp.dot(x, w1_ref[...], preferred_element_type=jnp.float32)
    h = jnp.maximum(h + b1_ref[...], 0.0)
    y = jnp.dot(h.astype(w2_ref.dtype), w2_ref[...],
                preferred_element_type=jnp.float32)
    o_ref[...] = (y + b2_ref[...]).astype(o_ref.dtype)


def prepare_projector_params(w1, b1, w2, b2):
    """One-time prep: lane-pad 300 -> 384 with zeros, cast weights to bf16.

    w1: [512, 300], b1: [1, 300], w2: [300, 300], b2: [1, 300]
    (weights pre-transposed vs. PyTorch so y = relu(x @ W1 + b1) @ W2 + b2).
    Call once and reuse the returned tuple for every forward call.
    """
    w1p = jnp.zeros((IN_DIM, HID_PAD), jnp.bfloat16).at[:, :HID_DIM].set(
        w1.astype(jnp.bfloat16))
    b1p = jnp.zeros((1, HID_PAD), jnp.float32).at[:, :HID_DIM].set(
        b1.reshape(1, HID_DIM).astype(jnp.float32))
    w2p = jnp.zeros((HID_PAD, OUT_PAD), jnp.bfloat16).at[:HID_DIM, :OUT_DIM].set(
        w2.astype(jnp.bfloat16))
    b2p = jnp.zeros((1, OUT_PAD), jnp.float32).at[:, :OUT_DIM].set(
        b2.reshape(1, OUT_DIM).astype(jnp.float32))
    return w1p, b1p, w2p, b2p


def projector_forward(x, params, *, block_b=None):
    """x: [B, 512] f32; params: output of prepare_projector_params.

    Returns [B, 300] f32.
    """
    w1p, b1p, w2p, b2p = params
    B, D = x.shape
    assert D == IN_DIM

    # --- batch tiling: >= 2-4 grid steps for pipelining / v7x megacore ------
    if block_b is None:
        if B <= 128:
            block_b = B                                  # single full block
        else:
            block_b = min(512, max(128, _round_up(pl.cdiv(B, 4), 128)))
    assert block_b == B or block_b % 8 == 0
    grid = (pl.cdiv(B, block_b),)                        # ragged last block OK

    flops = 2 * B * (IN_DIM * HID_PAD + HID_PAD * OUT_PAD)
    bytes_accessed = (x.size * 4 + w1p.size * 2 + w2p.size * 2
                      + b1p.size * 4 + b2p.size * 4 + B * OUT_PAD * 4)

    out = pl.pallas_call(
        projector_kernel,
        out_shape=jax.ShapeDtypeStruct((B, OUT_PAD), jnp.float32),
        grid_spec=pltpu.PrefetchScalarGridSpec(
            num_scalar_prefetch=0,
            grid=grid,
            in_specs=[
                pl.BlockSpec((block_b, IN_DIM), lambda i: (i, 0)),
                pl.BlockSpec((IN_DIM, HID_PAD), lambda i: (0, 0)),
                pl.BlockSpec((1, HID_PAD), lambda i: (0, 0)),
                pl.BlockSpec((HID_PAD, OUT_PAD), lambda i: (0, 0)),
                pl.BlockSpec((1, OUT_PAD), lambda i: (0, 0)),
            ],
            out_specs=pl.BlockSpec((block_b, OUT_PAD), lambda i: (i, 0)),
        ),
        compiler_params=pltpu.CompilerParams(
            dimension_semantics=("parallel",)),
        cost_estimate=pl.CostEstimate(
            flops=flops, transcendentals=0, bytes_accessed=bytes_accessed),
    )(x, w1p, b1p, w2p, b2p)

    return out[:, :OUT_DIM]


def init_params(key):
    """Deterministic init mirroring nn.Linear shapes (weights pre-transposed)."""
    k1, k2, k3, k4 = jax.random.split(key, 4)
    # PyTorch Linear default: U(-1/sqrt(fan_in), 1/sqrt(fan_in))
    lim1 = 1.0 / jnp.sqrt(IN_DIM)
    lim2 = 1.0 / jnp.sqrt(HID_DIM)
    w1 = jax.random.uniform(k1, (IN_DIM, HID_DIM), jnp.float32, -lim1, lim1)
    b1 = jax.random.uniform(k2, (1, HID_DIM), jnp.float32, -lim1, lim1)
    w2 = jax.random.uniform(k3, (HID_DIM, OUT_DIM), jnp.float32, -lim2, lim2)
    b2 = jax.random.uniform(k4, (1, OUT_DIM), jnp.float32, -lim2, lim2)
    return w1, b1, w2, b2


def _reference(x, w1, b1, w2, b2):
    # Same bf16-operand / f32-accumulate math as the kernel, in plain JAX.
    xb = x.astype(jnp.bfloat16)
    w1b = w1.astype(jnp.bfloat16)
    w2b = w2.astype(jnp.bfloat16)
    h = jnp.maximum(jnp.dot(xb, w1b, preferred_element_type=jnp.float32) + b1, 0.0)
    return jnp.dot(h.astype(jnp.bfloat16), w2b,
                   preferred_element_type=jnp.float32) + b2


if __name__ == "__main__":
    key = jax.random.PRNGKey(0)
    kx, kx2, kp = jax.random.split(key, 3)

    w1, b1, w2, b2 = init_params(kp)
    params = prepare_projector_params(w1, b1, w2, b2)   # one-time prep

    # --- small batch (single full block) -----------------------------------
    B = 8
    x = jax.random.normal(kx, (B, IN_DIM), jnp.float32)
    out = jax.block_until_ready(projector_forward(x, params))
    assert out.shape == (B, OUT_DIM)

    y_ref = _reference(x, w1, b1, w2, b2)
    assert jnp.allclose(out, y_ref, atol=1e-2, rtol=1e-2), \
        float(jnp.max(jnp.abs(out - y_ref)))

    y_f32 = jnp.maximum(x @ w1 + b1, 0.0) @ w2 + b2
    assert jnp.allclose(out, y_f32, atol=5e-2, rtol=5e-2), \
        float(jnp.max(jnp.abs(out - y_f32)))

    # --- ragged multi-step grid (exercises the no-pad batch path) -----------
    B2 = 200
    x2 = jax.random.normal(kx2, (B2, IN_DIM), jnp.float32)
    out2 = jax.block_until_ready(projector_forward(x2, params))
    assert out2.shape == (B2, OUT_DIM)
    y2_ref = _reference(x2, w1, b1, w2, b2)
    assert jnp.allclose(out2, y2_ref, atol=1e-2, rtol=1e-2), \
        float(jnp.max(jnp.abs(out2 - y2_ref)))

    print("KERNEL_OK")
</pallas_src>

<mosaic_0001>
module attributes {stable_mosaic.version = 11 : i64} {
  func.func @projector_kernel(%arg0: i32, %arg1: memref<8x512xf32, #tpu.memory_space<vmem>>, %arg2: memref<512x384xbf16, #tpu.memory_space<vmem>>, %arg3: memref<1x384xf32, #tpu.memory_space<vmem>>, %arg4: memref<384x384xbf16, #tpu.memory_space<vmem>>, %arg5: memref<1x384xf32, #tpu.memory_space<vmem>>, %arg6: memref<8x384xf32, #tpu.memory_space<vmem>>) attributes {dimension_semantics = [#tpu.dimension_semantics<parallel>], iteration_bounds = array<i64: 1>, scalar_prefetch = 0 : i64, scratch_operands = 0 : i64, tpu.core_type = #tpu.core_type<tc>, window_params = [{transform_indices = @transform_0, window_bounds = array<i64: 8, 512>}, {pipeline_mode = #tpu.pipeline_mode<synchronous>, transform_indices = @transform_1, window_bounds = array<i64: 512, 384>}, {pipeline_mode = #tpu.pipeline_mode<synchronous>, transform_indices = @transform_2, window_bounds = array<i64: 1, 384>}, {pipeline_mode = #tpu.pipeline_mode<synchronous>, transform_indices = @transform_3, window_bounds = array<i64: 384, 384>}, {pipeline_mode = #tpu.pipeline_mode<synchronous>, transform_indices = @transform_4, window_bounds = array<i64: 1, 384>}, {transform_indices = @transform_5, window_bounds = array<i64: 8, 384>}]} {
    %c0 = arith.constant 0 : index
    %c0_0 = arith.constant 0 : index
    %0 = vector.load %arg1[%c0, %c0_0] : memref<8x512xf32, #tpu.memory_space<vmem>>, vector<8x512xf32>
    %1 = arith.truncf %0 : vector<8x512xf32> to vector<8x512xbf16>
    %c0_1 = arith.constant 0 : index
    %c0_2 = arith.constant 0 : index
    %2 = vector.load %arg2[%c0_1, %c0_2] : memref<512x384xbf16, #tpu.memory_space<vmem>>, vector<512x384xbf16>
    %cst = arith.constant dense<0.000000e+00> : vector<8x384xf32>
    %3 = tpu.matmul %1, %2, %cst {dimension_numbers = #tpu.dot_dimension_numbers<[1], [0], [0], [1], [0, 0, 1, 1], [], []>} : vector<8x512xbf16>, vector<512x384xbf16>, vector<8x384xf32> -> vector<8x384xf32>
    %c0_3 = arith.constant 0 : index
    %c0_4 = arith.constant 0 : index
    %4 = vector.load %arg3[%c0_3, %c0_4] : memref<1x384xf32, #tpu.memory_space<vmem>>, vector<1x384xf32>
    %5 = vector.broadcast %4 : vector<1x384xf32> to vector<8x384xf32>
    %6 = arith.addf %3, %5 : vector<8x384xf32>
    %cst_5 = arith.constant 0.000000e+00 : f32
    %7 = vector.broadcast %cst_5 : f32 to vector<8x384xf32>
    %8 = arith.maximumf %6, %7 : vector<8x384xf32>
    %9 = arith.truncf %8 : vector<8x384xf32> to vector<8x384xbf16>
    %c0_6 = arith.constant 0 : index
    %c0_7 = arith.constant 0 : index
    %10 = vector.load %arg4[%c0_6, %c0_7] : memref<384x384xbf16, #tpu.memory_space<vmem>>, vector<384x384xbf16>
    %cst_8 = arith.constant dense<0.000000e+00> : vector<8x384xf32>
    %11 = tpu.matmul %9, %10, %cst_8 {dimension_numbers = #tpu.dot_dimension_numbers<[1], [0], [0], [1], [0, 0, 1, 1], [], []>} : vector<8x384xbf16>, vector<384x384xbf16>, vector<8x384xf32> -> vector<8x384xf32>
    %c0_9 = arith.constant 0 : index
    %c0_10 = arith.constant 0 : index
    %12 = vector.load %arg5[%c0_9, %c0_10] : memref<1x384xf32, #tpu.memory_space<vmem>>, vector<1x384xf32>
    %13 = vector.broadcast %12 : vector<1x384xf32> to vector<8x384xf32>
    %14 = arith.addf %11, %13 : vector<8x384xf32>
    %c0_11 = arith.constant 0 : index
    %c0_12 = arith.constant 0 : index
    %15 = vector.load %arg6[%c0_11, %c0_12] : memref<8x384xf32, #tpu.memory_space<vmem>>, vector<8x384xf32>
    tpu.vector_store %arg6[%c0_11, %c0_12], %14 {strides = array<i32>} : memref<8x384xf32, #tpu.memory_space<vmem>>, vector<8x384xf32>,
    return
  }
  func.func @transform_0(%arg0: i32) -> (i32, i32) {
    %c0_i32 = arith.constant 0 : i32
    %c0_i32_0 = arith.constant 0 : i32
    return %arg0, %c0_i32 : i32, i32
  }
  func.func @transform_1(%arg0: i32) -> (i32, i32) {
    %c0_i32 = arith.constant 0 : i32
    %c0_i32_0 = arith.constant 0 : i32
    %c0_i32_1 = arith.constant 0 : i32
    return %c0_i32, %c0_i32_0 : i32, i32
  }
  func.func @transform_2(%arg0: i32) -> (i32, i32) {
    %c0_i32 = arith.constant 0 : i32
    %c0_i32_0 = arith.constant 0 : i32
    %c0_i32_1 = arith.constant 0 : i32
    return %c0_i32, %c0_i32_0 : i32, i32
  }
  func.func @transform_3(%arg0: i32) -> (i32, i32) {
    %c0_i32 = arith.constant 0 : i32
    %c0_i32_0 = arith.constant 0 : i32
    %c0_i32_1 = arith.constant 0 : i32
    return %c0_i32, %c0_i32_0 : i32, i32
  }
  func.func @transform_4(%arg0: i32) -> (i32, i32) {
    %c0_i32 = arith.constant 0 : i32
    %c0_i32_0 = arith.constant 0 : i32
    %c0_i32_1 = arith.constant 0 : i32
    return %c0_i32, %c0_i32_0 : i32, i32
  }
  func.func @transform_5(%arg0: i32) -> (i32, i32) {
    %c0_i32 = arith.constant 0 : i32
    %c0_i32_0 = arith.constant 0 : i32
    return %arg0, %c0_i32 : i32, i32
  }
}

</mosaic_0001>

<bundles_post_ra>
// kernel: tpu_custom_call.1
= control target key start
LH: loop header
LB: loop body
LE: loop exit
PB: predicated region body
PF: predicated region fallthrough
CT: control target
= control target key end

     0   :  { %10 = vsyncpa [#allocation3], 0  ;;  %s2253_s0 = inlined_call_operand.hbm [shape: f32[8,512], index: 0, kind: input, shape index: {}]   ;;  %s2254_s1 = inlined_call_operand.hbm [shape: bf16[512,384], index: 1, kind: input, shape index: {}]   ;;  %s2255_s2 = inlined_call_operand.vmem [shape: f32[1,384], index: 2, kind: input, shape index: {}]   ;;  %s2256_s3 = inlined_call_operand.hbm [shape: bf16[384,384], index: 3, kind: input, shape index: {}]   ;;  %s2257_s4 = inlined_call_operand.vmem [shape: f32[1,384], index: 4, kind: input, shape index: {}]   ;;  %s2258_s5 = inlined_call_operand.hbm [shape: f32[8,384], index: 5, kind: output, shape index: {}]  }
   0x1   :  { %11 = vsyncpa [#allocation6], 0 }
   0x2   :  { %12 = vsyncpa [#allocation4], 0  ;;  %s2154_s18 = smov [#allocation5]  }
   0x3   :  { %s28_s19 = sshll.u32 %s2154_s18, 4  ;;  %s29_s19 = int_to_ptr.vmem [resolvable:$true] %s28_s19 }
   0x4   :  { %s2076_s20 = scalar_lea.vmem %s29_s19, 12288  ;;  %p2081_p1 = scmp.lt.s32.totalorder %s29_s19, %s29_s19 }
   0x5   :  { %p2077_p0 = scmp.ne.s32.totalorder %s29_s19, %s2076_s20  ;;  %p2082_p2 = scmp.lt.s32.totalorder %s2076_s20, %s2076_s20 }
   0x7   :  { %p2083_p3 = por %p2082_p2, %p2081_p1 }
   0x9   :  { %p2084_p4 = pnand %p2083_p3, %p2077_p0 }
   0xb   :  { %2087 = shalt.err (!%p2084_p4)
}
   0xc   :  { %s2155_s21 = smov 192   ;;  %s2156_s22 = smov 12  }
   0xd   :  { %34 = dma.hbm_to_vmem [thread:$0]  %s2254_s1, 12288, %s29_s19, [#allocation6], %s2155_s21, %s2155_s21, %s2156_s22  }
   0xe   :  { %s2157_s25 = smov [#allocation2]   ;;  %s2158_s27 = smov [#allocation7]  }
   0xf   :  { %s19_s26 = sshll.u32 %s2157_s25, 4  ;;  %s42_s28 = sshll.u32 %s2158_s27, 4  ;;  %s20_s26 = int_to_ptr.vmem [resolvable:$true] %s19_s26  ;;  %s43_s28 = int_to_ptr.vmem [resolvable:$true] %s42_s28 }
  0x10   :  { %s2096_s29 = scalar_lea.vmem %s20_s26, 512  ;;  %p2101_p6 = scmp.lt.s32.totalorder %s20_s26, %s20_s26 }
  0x11   :  { %p2097_p5 = scmp.ne.s32.totalorder %s20_s26, %s2096_s29  ;;  %p2102_p7 = scmp.lt.s32.totalorder %s2096_s29, %s2096_s29 }
  0x13   :  { %p2103_p8 = por %p2102_p7, %p2101_p6 }
  0x15   :  { %p2104_p9 = pnand %p2103_p8, %p2097_p5 }
  0x17   :  { %2107 = shalt.err (!%p2104_p9)
}
  0x18   :  { %22 = dma.hbm_to_vmem [thread:$0]  %s2253_s0, 512, %s20_s26, [#allocation3]  }
  0x19   :  { %s2116_s7 = scalar_lea.vmem %s43_s28, 9216  ;;  %p2121_p11 = scmp.lt.s32.totalorder %s43_s28, %s43_s28 }
  0x1a   :  { %p2117_p10 = scmp.ne.s32.totalorder %s43_s28, %s2116_s7  ;;  %p2122_p12 = scmp.lt.s32.totalorder %s2116_s7, %s2116_s7 }
  0x1c   :  { %p2123_p13 = por %p2122_p12, %p2121_p11 }
  0x1e   :  { %p2124_p0 = pnand %p2123_p13, %p2117_p10 }
  0x20   :  { %2127 = shalt.err (!%p2124_p0)
}
  0x21   :  { %48 = dma.hbm_to_vmem [thread:$0]  %s2256_s3, 9216, %s43_s28, [#allocation6], %s2155_s21, %s2155_s21, %s2156_s22  }
  0x22   :  { %2148 = dma.done.wait [#allocation3], 512  }
  0x23   :  { %2149 = vsyncadd [#allocation3], 4294966784 }
  0x24   :  { %2150 = dma.done.wait [#allocation6], 21504  }
  0x25   :  { %2151 = vsyncadd [#allocation6], 4294945792  ;;  %v1844_v0 = vld [vmem:[#allocation5 + $0xac] ss:$12 sps:$4 sm:$0xff]   ;;  %v1848_v2 = vld [vmem:[#allocation5 + $0xa8] ss:$12 sps:$4 sm:$0xff]  }
  0x26   :  { %v1846_v1 = vld [vmem:[#allocation5 + $0x22c] ss:$12 sps:$4 sm:$0xff]   ;;  %726 = vmatprep.subr.bf16.mxu0 %v1844_v0  ;;  %v1849_v3 = vld [vmem:[#allocation5 + $0x228] ss:$12 sps:$4 sm:$0xff]   ;;  %v1854_v6 = vld [vmem:[#allocation5 + $0x90] ss:$12 sps:$4 sm:$0xff]  }
  0x27   :  { %767 = vmatprep.subr.bf16.mxu1 %v1846_v1  ;;  %v1850_v4 = vld [vmem:[#allocation5 + $0x94] ss:$12 sps:$4 sm:$0xff]   ;;  %727 = vmatpush1.bf16.msra.mxu0 %v1848_v2  ;;  %v1855_v7 = vld [vmem:[#allocation5 + $0x210] ss:$12 sps:$4 sm:$0xff]   ;;  %v1860_v10 = vld [vmem:[#allocation5 + $0x78] ss:$12 sps:$4 sm:$0xff]  }
  0x28   :  { %768 = vmatpush1.bf16.msra.mxu1 %v1849_v3  ;;  %v1852_v5 = vld [vmem:[#allocation5 + $0x214] ss:$12 sps:$4 sm:$0xff]   ;;  %728 = vmatprep.subr.bf16.mxu0 %v1850_v4  ;;  %v1856_v8 = vld [vmem:[#allocation5 + $0x7c] ss:$12 sps:$4 sm:$0xff]   ;;  %v1861_v11 = vld [vmem:[#allocation5 + $0x1f8] ss:$12 sps:$4 sm:$0xff]  }
  0x29   :  { %769 = vmatprep.subr.bf16.mxu1 %v1852_v5  ;;  %v1858_v9 = vld [vmem:[#allocation5 + $0x1fc] ss:$12 sps:$4 sm:$0xff]   ;;  %v1862_v12 = vld [vmem:[#allocation5 + $0x64] ss:$12 sps:$4 sm:$0xff]   ;;  %v1866_v14 = vld [vmem:[#allocation5 + $0x60] ss:$12 sps:$4 sm:$0xff]  }
  0x2a   :  { %v1864_v13 = vld [vmem:[#allocation5 + $0x1e4] ss:$12 sps:$4 sm:$0xff]   ;;  %v1867_v15 = vld [vmem:[#allocation5 + $0x1e0] ss:$12 sps:$4 sm:$0xff]   ;;  %v1872_v18 = vld [vmem:[#allocation5 + $0x48] ss:$12 sps:$4 sm:$0xff]  }
  0x2b   :  { %729 = vmatpush1.bf16.msra.mxu0 %v1854_v6  ;;  %v1868_v16 = vld [vmem:[#allocation5 + $0x4c] ss:$12 sps:$4 sm:$0xff]   ;;  %v1873_v19 = vld [vmem:[#allocation5 + $0x1c8] ss:$12 sps:$4 sm:$0xff]   ;;  %v1878_v22 = vld [vmem:[#allocation5 + $0x30] ss:$12 sps:$4 sm:$0xff]  }
  0x2c   :  { %770 = vmatpush1.bf16.msra.mxu1 %v1855_v7  ;;  %730 = vmatprep.subr.bf16.mxu0 %v1856_v8  ;;  %v1870_v17 = vld [vmem:[#allocation5 + $0x1cc] ss:$12 sps:$4 sm:$0xff]   ;;  %v1874_v20 = vld [vmem:[#allocation5 + $0x34] ss:$12 sps:$4 sm:$0xff]   ;;  %v1879_v23 = vld [vmem:[#allocation5 + $0x1b0] ss:$12 sps:$4 sm:$0xff]  }
  0x2d   :  { %771 = vmatprep.subr.bf16.mxu1 %v1858_v9  ;;  %v1876_v21 = vld [vmem:[#allocation5 + $0x1b4] ss:$12 sps:$4 sm:$0xff]   ;;  %v1880_v24 = vld [vmem:[#allocation5 + $0x1c] ss:$12 sps:$4 sm:$0xff]   ;;  %v1884_v26 = vld [vmem:[#allocation5 + $0x18] ss:$12 sps:$4 sm:$0xff]  }
  0x2e   :  { %v1882_v25 = vld [vmem:[#allocation5 + $0x19c] ss:$12 sps:$4 sm:$0xff]   ;;  %v1885_v27 = vld [vmem:[#allocation5 + $0x198] ss:$12 sps:$4 sm:$0xff]   ;;  %v1890_v30 = vld [vmem:[#allocation5] ss:$12 sps:$4 sm:$0xff]  }
  0x2f   :  { %731 = vmatpush1.bf16.msra.mxu0 %v1860_v10  ;;  %v1886_v28 = vld [vmem:[#allocation5 + $0x4] ss:$12 sps:$4 sm:$0xff]   ;;  %v1891_v31 = vld [vmem:[#allocation5 + $0x180] ss:$12 sps:$4 sm:$0xff]   ;;  %v1896_v34 = vld [vmem:[#allocation5 + $0x168] ss:$12 sps:$4 sm:$0xff]  }
  0x30   :  { %772 = vmatpush1.bf16.msra.mxu1 %v1861_v11  ;;  %732 = vmatprep.subr.bf16.mxu0 %v1862_v12  ;;  %v1888_v29 = vld [vmem:[#allocation5 + $0x184] ss:$12 sps:$4 sm:$0xff]   ;;  %v1892_v32 = vld [vmem:[#allocation5 + $0x16c] ss:$12 sps:$4 sm:$0xff]   ;;  %v1897_v35 = vld [vmem:[#allocation5 + $0x2e8] ss:$12 sps:$4 sm:$0xff]  }
  0x31   :  { %773 = vmatprep.subr.bf16.mxu1 %v1864_v13  ;;  %v1894_v33 = vld [vmem:[#allocation5 + $0x2ec] ss:$12 sps:$4 sm:$0xff]   ;;  %v1898_v36 = vld [vmem:[#allocation5 + $0x154] ss:$12 sps:$4 sm:$0xff]   ;;  %v1902_v38 = vld [vmem:[#allocation5 + $0x150] ss:$12 sps:$4 sm:$0xff]  }
  0x32   :  { %v1900_v37 = vld [vmem:[#allocation5 + $0x2d4] ss:$12 sps:$4 sm:$0xff]   ;;  %v1903_v39 = vld [vmem:[#allocation5 + $0x2d0] ss:$12 sps:$4 sm:$0xff]   ;;  %v1908_v42 = vld [vmem:[#allocation5 + $0x138] ss:$12 sps:$4 sm:$0xff]  }
  0x33   :  { %733 = vmatpush1.bf16.msra.mxu0 %v1866_v14  ;;  %v1904_v40 = vld [vmem:[#allocation5 + $0x13c] ss:$12 sps:$4 sm:$0xff]   ;;  %v1909_v43 = vld [vmem:[#allocation5 + $0x2b8] ss:$12 sps:$4 sm:$0xff]   ;;  %v1914_v47 = vld [vmem:[#allocation5 + $0x120] ss:$12 sps:$4 sm:$0xff]  }
  0x34   :  { %774 = vmatpush1.bf16.msra.mxu1 %v1867_v15  ;;  %734 = vmatprep.subr.bf16.mxu0 %v1868_v16  ;;  %v1906_v41 = vld [vmem:[#allocation5 + $0x2bc] ss:$12 sps:$4 sm:$0xff]   ;;  %v1910_v44 = vld [vmem:[#allocation5 + $0x124] ss:$12 sps:$4 sm:$0xff]   ;;  %v1915_v48 = vld [vmem:[#allocation5 + $0x2a0] ss:$12 sps:$4 sm:$0xff]  }
  0x35   :  { %775 = vmatprep.subr.bf16.mxu1 %v1870_v17  ;;  %v1912_v45 = vld [vmem:[#allocation5 + $0x2a4] ss:$12 sps:$4 sm:$0xff]   ;;  %v62_v46 = vld [vmem:[#allocation2 + $0x8] sm:$0xff]  ;;  %v64_v50 = vld [vmem:[#allocation2 + $0x18] sm:$0xff]  ;;  %vm2161_vm0 = vmmov 0  }
  0x36   :  { %v2202_v49 = vpack.c.bf16 %v62_v46, %v62_v46  ;;  %v1916_v51 = vld [vmem:[#allocation5 + $0x10c] ss:$12 sps:$4 sm:$0xff]   ;;  %v68_v52 = vpack.c.bf16 %v64_v50, %v64_v50  ;;  %v1920_v54 = vld [vmem:[#allocation5 + $0x108] ss:$12 sps:$4 sm:$0xff]   ;;  %v1926_v58 = vld [vmem:[#allocation5 + $0xf0] ss:$12 sps:$4 sm:$0xff]  }
  0x37   :  { %735 = vmatpush1.bf16.msra.mxu0 %v1872_v18  ;;  %v1918_v53 = vld [vmem:[#allocation5 + $0x28c] ss:$12 sps:$4 sm:$0xff]   ;;  %v1921_v55 = vld [vmem:[#allocation5 + $0x288] ss:$12 sps:$4 sm:$0xff]   ;;  %v1927_v59 = vld [vmem:[#allocation5 + $0x270] ss:$12 sps:$4 sm:$0xff]  }
  0x38   :  { %776 = vmatpush1.bf16.msra.mxu1 %v1873_v19  ;;  %736 = vmatprep.subr.bf16.mxu0 %v1874_v20  ;;  %v1922_v56 = vld [vmem:[#allocation5 + $0xf4] ss:$12 sps:$4 sm:$0xff]   ;;  %v1928_v60 = vld [vmem:[#allocation5 + $0xdc] ss:$12 sps:$4 sm:$0xff]   ;;  %v1932_v62 = vld [vmem:[#allocation5 + $0xd8] ss:$12 sps:$4 sm:$0xff]  }
  0x39   :  { %777 = vmatprep.subr.bf16.mxu1 %v1876_v21  ;;  %758 = vmatprep.mubr.bf16.mxu0 %v2202_v49  ;;  %v1924_v57 = vld [vmem:[#allocation5 + $0x274] ss:$12 sps:$4 sm:$0xff]   ;;  %v1930_v61 = vld [vmem:[#allocation5 + $0x25c] ss:$12 sps:$4 sm:$0xff]   ;;  %v1933_v63 = vld [vmem:[#allocation5 + $0x258] ss:$12 sps:$4 sm:$0xff]  }
  0x3a   :  { %799 = vmatprep.mubr.bf16.mxu1 %v68_v52  ;;  %v1934_v0 = vld [vmem:[#allocation5 + $0xc4] ss:$12 sps:$4 sm:$0xff]   ;;  %v1938_v2 = vld [vmem:[#allocation5 + $0xc0] ss:$12 sps:$4 sm:$0xff]   ;;  %v1952_v20 = vld [vmem:[#allocation5 + $0x128] ss:$12 sps:$4 sm:$0xff]  }
  0x3b   :  { %737 = vmatpush1.bf16.msra.mxu0 %v1878_v22  ;;  %v1936_v1 = vld [vmem:[#allocation5 + $0x244] ss:$12 sps:$4 sm:$0xff]   ;;  %v1939_v3 = vld [vmem:[#allocation5 + $0x240] ss:$12 sps:$4 sm:$0xff]   ;;  %v1953_v21 = vld [vmem:[#allocation5 + $0x2a8] ss:$12 sps:$4 sm:$0xff]  }
  0x3c   :  { %778 = vmatpush1.bf16.msra.mxu1 %v1879_v23  ;;  %738 = vmatprep.subr.bf16.mxu0 %v1880_v24  ;;  %v61_v4 = vld [vmem:[#allocation2] sm:$0xff]  ;;  %v63_v5 = vld [vmem:[#allocation2 + $0x10] sm:$0xff] }
  0x3d   :  { %779 = vmatprep.subr.bf16.mxu1 %v1882_v25  ;;  %v1940_v6 = vld [vmem:[#allocation5 + $0x170] ss:$12 sps:$4 sm:$0xff]   ;;  %v2205_v9 = vpack.c.bf16 %v61_v4, %v61_v4  ;;  %v2207_v10 = vpack.c.bf16 %v63_v5, %v63_v5  ;;  %v1944_v12 = vld [vmem:[#allocation5 + $0x158] ss:$12 sps:$4 sm:$0xff]   ;;  %v1948_v16 = vld [vmem:[#allocation5 + $0x140] ss:$12 sps:$4 sm:$0xff]  }
  0x3e   :  { %v1941_v7 = vld [vmem:[#allocation5 + $0x2f0] ss:$12 sps:$4 sm:$0xff]   ;;  %v1945_v13 = vld [vmem:[#allocation5 + $0x2d8] ss:$12 sps:$4 sm:$0xff]   ;;  %v1949_v17 = vld [vmem:[#allocation5 + $0x2c0] ss:$12 sps:$4 sm:$0xff]  }
  0x3f   :  { %739 = vmatpush1.bf16.msra.mxu0 %v1884_v26  ;;  %v1942_v8 = vld [vmem:[#allocation5 + $0xb0] ss:$12 sps:$4 sm:$0xff]   ;;  %v1946_v14 = vld [vmem:[#allocation5 + $0x98] ss:$12 sps:$4 sm:$0xff]   ;;  %v1950_v18 = vld [vmem:[#allocation5 + $0x80] ss:$12 sps:$4 sm:$0xff]  }
  0x40   :  { %780 = vmatpush1.bf16.msra.mxu1 %v1885_v27  ;;  %740 = vmatprep.subr.bf16.mxu0 %v1886_v28  ;;  %v1943_v11 = vld [vmem:[#allocation5 + $0x230] ss:$12 sps:$4 sm:$0xff]   ;;  %v1947_v15 = vld [vmem:[#allocation5 + $0x218] ss:$12 sps:$4 sm:$0xff]   ;;  %v1951_v19 = vld [vmem:[#allocation5 + $0x200] ss:$12 sps:$4 sm:$0xff]  }
  0x41   :  { %781 = vmatprep.subr.bf16.mxu1 %v1888_v29  ;;  %v1954_v22 = vld [vmem:[#allocation5 + $0x68] ss:$12 sps:$4 sm:$0xff]   ;;  %v1956_v24 = vld [vmem:[#allocation5 + $0x110] ss:$12 sps:$4 sm:$0xff]   ;;  %v1960_v28 = vld [vmem:[#allocation5 + $0xf8] ss:$12 sps:$4 sm:$0xff]  }
  0x42   :  { %v1955_v23 = vld [vmem:[#allocation5 + $0x1e8] ss:$12 sps:$4 sm:$0xff]   ;;  %v1957_v25 = vld [vmem:[#allocation5 + $0x290] ss:$12 sps:$4 sm:$0xff]   ;;  %v1961_v29 = vld [vmem:[#allocation5 + $0x278] ss:$12 sps:$4 sm:$0xff]  }
  0x43   :  { %741 = vmatpush1.bf16.msra.mxu0 %v1890_v30  ;;  %v1958_v26 = vld [vmem:[#allocation5 + $0x50] ss:$12 sps:$4 sm:$0xff]   ;;  %v1962_v30 = vld [vmem:[#allocation5 + $0x38] ss:$12 sps:$4 sm:$0xff]   ;;  %v1989_v50 = vld [vmem:[#allocation7 + $0x34] ss:$12 sps:$4 sm:$0xff]  }
  0x44   :  { %782 = vmatpush1.bf16.msra.mxu1 %v1891_v31  ;;  %742 = vmatprep.subr.bf16.mxu0 %v1892_v32  ;;  %v1959_v27 = vld [vmem:[#allocation5 + $0x1d0] ss:$12 sps:$4 sm:$0xff]   ;;  %v1963_v31 = vld [vmem:[#allocation5 + $0x1b8] ss:$12 sps:$4 sm:$0xff]   ;;  %v1964_v32 = vld [vmem:[#allocation5 + $0xe0] ss:$12 sps:$4 sm:$0xff]  }
  0x45   :  { %783 = vmatprep.subr.bf16.mxu1 %v1894_v33  ;;  %v1965_v33 = vld [vmem:[#allocation5 + $0x260] ss:$12 sps:$4 sm:$0xff]   ;;  %v1983_v46 = vld [vmem:[#allocation7 + $0x64] ss:$12 sps:$4 sm:$0xff]  }
  0x46   :  { %v2024_v4 = vld [vmem:[#allocation7 + $0x210] ss:$12 sps:$4 sm:$0xff]   ;;  %v2026_v5 = vld [vmem:[#allocation7 + $0x214] ss:$12 sps:$4 sm:$0xff]  }
  0x47   :  { %743 = vmatpush2.bf16.msra.mxu0 %v1896_v34  ;;  %v1966_v34 = vld [vmem:[#allocation5 + $0x20] ss:$12 sps:$4 sm:$0xff]  }
  0x48   :  { %784 = vmatpush2.bf16.msra.mxu1 %v1897_v35  ;;  %744 = vmatprep.subr.bf16.mxu0 %v1898_v36  ;;  %v1967_v35 = vld [vmem:[#allocation5 + $0x1a0] ss:$12 sps:$4 sm:$0xff]   ;;  %v1968_v36 = vld [vmem:[#allocation5 + $0xc8] ss:$12 sps:$4 sm:$0xff]  }
  0x49   :  { %785 = vmatprep.subr.bf16.mxu1 %v1900_v37  ;;  %v1969_v37 = vld [vmem:[#allocation5 + $0x248] ss:$12 sps:$4 sm:$0xff]  }
  0x4b   :  { %745 = vmatpush2.bf16.msra.mxu0 %v1902_v38  ;;  %v1970_v38 = vld [vmem:[#allocation5 + $0x8] ss:$12 sps:$4 sm:$0xff]  }
  0x4c   :  { %786 = vmatpush2.bf16.msra.mxu1 %v1903_v39  ;;  %746 = vmatprep.subr.bf16.mxu0 %v1904_v40  ;;  %v1971_v39 = vld [vmem:[#allocation5 + $0x188] ss:$12 sps:$4 sm:$0xff]   ;;  %v1974_v40 = vld [vmem:[#allocation7 + $0xac] ss:$12 sps:$4 sm:$0xff]  }
  0x4d   :  { %787 = vmatprep.subr.bf16.mxu1 %v1906_v41  ;;  %v1972_v41 = vld [vmem:[#allocation7 + $0xa8] ss:$12 sps:$4 sm:$0xff]  }
  0x4f   :  { %747 = vmatpush2.bf16.msra.mxu0 %v1908_v42  ;;  %v1977_v42 = vld [vmem:[#allocation7 + $0x94] ss:$12 sps:$4 sm:$0xff]  }
  0x50   :  { %788 = vmatpush2.bf16.msra.mxu1 %v1909_v43  ;;  %748 = vmatprep.subr.bf16.mxu0 %v1910_v44  ;;  %v1975_v43 = vld [vmem:[#allocation7 + $0x90] ss:$12 sps:$4 sm:$0xff]  }
  0x51   :  { %789 = vmatprep.subr.bf16.mxu1 %v1912_v45  ;;  %v1980_v44 = vld [vmem:[#allocation7 + $0x7c] ss:$12 sps:$4 sm:$0xff]   ;;  %v1978_v45 = vld [vmem:[#allocation7 + $0x78] ss:$12 sps:$4 sm:$0xff]  }
  0x53   :  { %749 = vmatpush2.bf16.msra.mxu0 %v1914_v47  ;;  %v1981_v47 = vld [vmem:[#allocation7 + $0x60] ss:$12 sps:$4 sm:$0xff]  }
  0x54   :  { %790 = vmatpush2.bf16.msra.mxu1 %v1915_v48  ;;  %750 = vmatprep.subr.bf16.mxu0 %v1916_v51  ;;  %v1986_v48 = vld [vmem:[#allocation7 + $0x4c] ss:$12 sps:$4 sm:$0xff]   ;;  %v1987_v51 = vld [vmem:[#allocation7 + $0x30] ss:$12 sps:$4 sm:$0xff]  }
  0x55   :  { %791 = vmatprep.subr.bf16.mxu1 %v1918_v53  ;;  %v1990_v53 = vld [vmem:[#allocation7 + $0x18] ss:$12 sps:$4 sm:$0xff]  }
  0x57   :  { %751 = vmatpush2.bf16.msra.mxu0 %v1920_v54  ;;  %v1995_v54 = vld [vmem:[#allocation7 + $0x4] ss:$12 sps:$4 sm:$0xff]  }
  0x58   :  { %792 = vmatpush2.bf16.msra.mxu1 %v1921_v55  ;;  %752 = vmatprep.subr.bf16.mxu0 %v1922_v56  ;;  %v1993_v55 = vld [vmem:[#allocation7] ss:$12 sps:$4 sm:$0xff]  }
  0x59   :  { %793 = vmatprep.subr.bf16.mxu1 %v1924_v57  ;;  %v1998_v56 = vld [vmem:[#allocation7 + $0x16c] ss:$12 sps:$4 sm:$0xff]   ;;  %v1996_v57 = vld [vmem:[#allocation7 + $0x168] ss:$12 sps:$4 sm:$0xff]  }
  0x5b   :  { %753 = vmatpush2.bf16.msra.mxu0 %v1926_v58  ;;  %v2001_v58 = vld [vmem:[#allocation7 + $0x154] ss:$12 sps:$4 sm:$0xff]  }
  0x5c   :  { %794 = vmatpush2.bf16.msra.mxu1 %v1927_v59  ;;  %754 = vmatprep.subr.bf16.mxu0 %v1928_v60  ;;  %v1999_v59 = vld [vmem:[#allocation7 + $0x150] ss:$12 sps:$4 sm:$0xff]  }
  0x5d   :  { %795 = vmatprep.subr.bf16.mxu1 %v1930_v61  ;;  %v2004_v60 = vld [vmem:[#allocation7 + $0x13c] ss:$12 sps:$4 sm:$0xff]   ;;  %v2002_v61 = vld [vmem:[#allocation7 + $0x138] ss:$12 sps:$4 sm:$0xff]  }
  0x5f   :  { %755 = vmatpush2.bf16.msra.mxu0 %v1932_v62  ;;  %v2007_v62 = vld [vmem:[#allocation7 + $0x124] ss:$12 sps:$4 sm:$0xff]  }
  0x60   :  { %796 = vmatpush2.bf16.msra.mxu1 %v1933_v63  ;;  %756 = vmatprep.subr.bf16.mxu0 %v1934_v0  ;;  %v2005_v63 = vld [vmem:[#allocation7 + $0x120] ss:$12 sps:$4 sm:$0xff]  }
  0x61   :  { %797 = vmatprep.subr.bf16.mxu1 %v1936_v1  ;;  %v2010_v0 = vld [vmem:[#allocation7 + $0x10c] ss:$12 sps:$4 sm:$0xff]  }
  0x62   :  { %v2022_v1 = vld [vmem:[#allocation7 + $0x22c] ss:$12 sps:$4 sm:$0xff]  }
  0x63   :  { %757 = vmatpush2.bf16.msra.mxu0 %v1938_v2  ;;  %v2020_v2 = vld [vmem:[#allocation7 + $0x228] ss:$12 sps:$4 sm:$0xff]  }
  0x64   :  { %798 = vmatpush2.bf16.msra.mxu1 %v1939_v3  ;;  %1740 = vmatprep.subr.bf16.mxu0 %v1940_v6  ;;  %v2008_v3 = vld [vmem:[#allocation7 + $0x108] ss:$12 sps:$4 sm:$0xff]  }
  0x65   :  { %1762 = vmatprep.subr.bf16.mxu1 %v1941_v7  ;;  %v2013_v6 = vld [vmem:[#allocation7 + $0xf4] ss:$12 sps:$4 sm:$0xff]   ;;  %v2011_v7 = vld [vmem:[#allocation7 + $0xf0] ss:$12 sps:$4 sm:$0xff]  }
  0x66   :  { %759 = vmatmul.mubr.bf16.vlgmr.msra.gmra.mxu0 %v2205_v9 }
  0x67   :  { %800 = vmatmul.mubr.bf16.vlgmr.msra.gmra.mxu1 %v2207_v10  ;;  %1741 = vmatpush3.bf16.msra.mxu0 %v1942_v8  ;;  %v2028_v8 = vld [vmem:[#allocation7 + $0x1f8] ss:$12 sps:$4 sm:$0xff]  }
  0x68   :  { %1763 = vmatpush3.bf16.msra.mxu1 %v1943_v11  ;;  %1742 = vmatprep.subr.bf16.mxu0 %v1944_v12  ;;  %v2014_v11 = vld [vmem:[#allocation7 + $0xd8] ss:$12 sps:$4 sm:$0xff]   ;;  %v2032_v12 = vld [vmem:[#allocation7 + $0x1e0] ss:$12 sps:$4 sm:$0xff]  }
  0x69   :  { %1764 = vmatprep.subr.bf16.mxu1 %v1945_v13  ;;  %840 = vmatprep.mubr.bf16.mxu0 %v2202_v49  ;;  %v1984_v49 = vld [vmem:[#allocation7 + $0x48] ss:$12 sps:$4 sm:$0xff]   ;;  %v2034_v13 = vld [vmem:[#allocation7 + $0x1e4] ss:$12 sps:$4 sm:$0xff]  }
  0x6a   :  { %880 = vmatprep.mubr.bf16.mxu1 %v68_v52  ;;  %v1992_v52 = vld [vmem:[#allocation7 + $0x1c] ss:$12 sps:$4 sm:$0xff]  }
  0x6b   :  { %1743 = vmatpush3.bf16.msra.mxu0 %v1946_v14  ;;  %v2019_v14 = vld [vmem:[#allocation7 + $0xc4] ss:$12 sps:$4 sm:$0xff]  }
  0x6c   :  { %1765 = vmatpush3.bf16.msra.mxu1 %v1947_v15  ;;  %1744 = vmatprep.subr.bf16.mxu0 %v1948_v16  ;;  %v2017_v15 = vld [vmem:[#allocation7 + $0xc0] ss:$12 sps:$4 sm:$0xff]   ;;  %v2036_v16 = vld [vmem:[#allocation7 + $0x1c8] ss:$12 sps:$4 sm:$0xff]  }
  0x6d   :  { %1766 = vmatprep.subr.bf16.mxu1 %v1949_v17  ;;  %v2038_v17 = vld [vmem:[#allocation7 + $0x1cc] ss:$12 sps:$4 sm:$0xff]  }
  0x6f   :  { %1745 = vmatpush3.bf16.msra.mxu0 %v1950_v18  ;;  %v2159_v18 = vmov 0.0  }
  0x70   :  { %1767 = vmatpush3.bf16.msra.mxu1 %v1951_v19  ;;  %1746 = vmatprep.subr.bf16.mxu0 %v1952_v20  ;;  %v2042_v19 = vld [vmem:[#allocation7 + $0x1b4] ss:$12 sps:$4 sm:$0xff]   ;;  %v2040_v20 = vld [vmem:[#allocation7 + $0x1b0] ss:$12 sps:$4 sm:$0xff]  }
  0x71   :  { %1768 = vmatprep.subr.bf16.mxu1 %v1953_v21  ;;  %v2046_v21 = vld [vmem:[#allocation7 + $0x19c] ss:$12 sps:$4 sm:$0xff]  }
  0x73   :  { %1747 = vmatpush3.bf16.msra.mxu0 %v1954_v22  ;;  %v2044_v22 = vld [vmem:[#allocation7 + $0x198] ss:$12 sps:$4 sm:$0xff]  }
  0x74   :  { %1769 = vmatpush3.bf16.msra.mxu1 %v1955_v23  ;;  %1748 = vmatprep.subr.bf16.mxu0 %v1956_v24  ;;  %v2050_v23 = vld [vmem:[#allocation7 + $0x184] ss:$12 sps:$4 sm:$0xff]   ;;  %v2048_v24 = vld [vmem:[#allocation7 + $0x180] ss:$12 sps:$4 sm:$0xff]  }
  0x75   :  { %1770 = vmatprep.subr.bf16.mxu1 %v1957_v25  ;;  %v2052_v25 = vld [vmem:[#allocation7 + $0x170] ss:$12 sps:$4 sm:$0xff]  }
  0x77   :  { %1749 = vmatpush3.bf16.msra.mxu0 %v1958_v26  ;;  %v2160_v26 = vmov 0  }
  0x78   :  { %1771 = vmatpush3.bf16.msra.mxu1 %v1959_v27  ;;  %1750 = vmatprep.subr.bf16.mxu0 %v1960_v28  ;;  %v199_v27 = vlaneseq }
  0x79   :  { %1772 = vmatprep.subr.bf16.mxu1 %v1961_v29 }
  0x7a   :  { %v2215_v28 = vshrl.u32 %v199_v27, 7 }
  0x7b   :  { %1751 = vmatpush3.bf16.msra.mxu0 %v1962_v30  ;;  %v197_v30 = vld [vmem:[%s2255_s2] sm:$0x7] }
  0x7c   :  { %1773 = vmatpush3.bf16.msra.mxu1 %v1963_v31  ;;  %1752 = vmatprep.subr.bf16.mxu0 %v1964_v32  ;;  %v201_v29 = vsub.s32 0, %v2215_v28  ;;  %v205_v31 = vsub.s32 1, %v2215_v28 }
  0x7d   :  { %1774 = vmatprep.subr.bf16.mxu1 %v1965_v33 }
  0x7e   :  { %v202_v32 = vrot.slane %v197_v30, %v201_v29  ;;  %v206_v33 = vrot.slane %v197_v30, %v205_v31 }
  0x7f   :  { %1753 = vmatpush3.bf16.msra.mxu0 %v1966_v34 }
  0x80   :  { %1775 = vmatpush3.bf16.msra.mxu1 %v1967_v35  ;;  %1754 = vmatprep.subr.bf16.mxu0 %v1968_v36 }
  0x81   :  { %1776 = vmatprep.subr.bf16.mxu1 %v1969_v37 }
  0x83   :  { %1755 = vmatpush3.bf16.msra.mxu0 %v1970_v38 }
  0x84   :  { %1777 = vmatpush3.bf16.msra.mxu1 %v1971_v39  ;;  %1391 = vmatprep.subr.bf16.mxu0 %v1974_v40 }
  0x85   :  { %1432 = vmatprep.subr.bf16.mxu1 %v2022_v1 }
  0x86   :  { %841 = vmatmul.mubr.bf16.vlgmr.msra.gmra.mxu0 %v2205_v9  ;;  %v2030_v9 = vld [vmem:[#allocation7 + $0x1fc] ss:$12 sps:$4 sm:$0xff]  }
  0x87   :  { %881 = vmatmul.mubr.bf16.vlgmr.msra.gmra.mxu1 %v2207_v10  ;;  %1392 = vmatpush1.bf16.msra.mxu0 %v1972_v41  ;;  %v2016_v10 = vld [vmem:[#allocation7 + $0xdc] ss:$12 sps:$4 sm:$0xff]  }
  0x88   :  { %1393 = vmatprep.subr.bf16.mxu0 %v1977_v42  ;;  %1433 = vmatpush1.bf16.msra.mxu1 %v2020_v2 }
  0x89   :  { %1434 = vmatprep.subr.bf16.mxu1 %v2026_v5  ;;  %1464 = vmatprep.mubr.bf16.mxu1 %v2160_v26 }
  0x8b   :  { %1394 = vmatpush1.bf16.msra.mxu0 %v1975_v43 }
  0x8c   :  { %1395 = vmatprep.subr.bf16.mxu0 %v1980_v44  ;;  %1435 = vmatpush1.bf16.msra.mxu1 %v2024_v4  ;;  %v2051_v4 = vld [vmem:[#allocation7 + $0x188] ss:$12 sps:$4 sm:$0xff]  }
  0x8d   :  { %1436 = vmatprep.subr.bf16.mxu1 %v2030_v9  ;;  %v2053_v9 = vld [vmem:[#allocation7 + $0xb0] ss:$12 sps:$4 sm:$0xff]  }
  0x8f   :  { %1396 = vmatpush1.bf16.msra.mxu0 %v1978_v45 }
  0x90   :  { %1397 = vmatprep.subr.bf16.mxu0 %v1983_v46  ;;  %1437 = vmatpush1.bf16.msra.mxu1 %v2028_v8 }
  0x91   :  { %1438 = vmatprep.subr.bf16.mxu1 %v2034_v13  ;;  %v2056_v13 = vld [vmem:[#allocation7 + $0x140] ss:$12 sps:$4 sm:$0xff]  }
  0x93   :  { %1398 = vmatpush1.bf16.msra.mxu0 %v1981_v47 }
  0x94   :  { %1399 = vmatprep.subr.bf16.mxu0 %v1986_v48  ;;  %1439 = vmatpush1.bf16.msra.mxu1 %v2032_v12  ;;  %v2055_v12 = vld [vmem:[#allocation7 + $0x98] ss:$12 sps:$4 sm:$0xff]  }
  0x95   :  { %1440 = vmatprep.subr.bf16.mxu1 %v2038_v17  ;;  %v2060_v17 = vld [vmem:[#allocation7 + $0x110] ss:$12 sps:$4 sm:$0xff]  }
  0x97   :  { %1400 = vmatpush1.bf16.msra.mxu0 %v1984_v49  ;;  %v2023_v49 = vld [vmem:[#allocation7 + $0x230] ss:$12 sps:$4 sm:$0xff]  }
  0x98   :  { %1401 = vmatprep.subr.bf16.mxu0 %v1989_v50  ;;  %1441 = vmatpush1.bf16.msra.mxu1 %v2036_v16  ;;  %v2059_v16 = vld [vmem:[#allocation7 + $0x68] ss:$12 sps:$4 sm:$0xff]  }
  0x99   :  { %1442 = vmatprep.subr.bf16.mxu1 %v2042_v19  ;;  %v2062_v19 = vld [vmem:[#allocation7 + $0xf8] ss:$12 sps:$4 sm:$0xff]  }
  0x9b   :  { %1402 = vmatpush1.bf16.msra.mxu0 %v1987_v51  ;;  %v2027_v51 = vld [vmem:[#allocation7 + $0x218] ss:$12 sps:$4 sm:$0xff]  }
  0x9c   :  { %1403 = vmatprep.subr.bf16.mxu0 %v1992_v52  ;;  %1443 = vmatpush1.bf16.msra.mxu1 %v2040_v20  ;;  %v2031_v52 = vld [vmem:[#allocation7 + $0x200] ss:$12 sps:$4 sm:$0xff]   ;;  %v2063_v20 = vld [vmem:[#allocation7 + $0x38] ss:$12 sps:$4 sm:$0xff]  }
  0x9d   :  { %1444 = vmatprep.subr.bf16.mxu1 %v2046_v21  ;;  %v2064_v21 = vld [vmem:[#allocation7 + $0xe0] ss:$12 sps:$4 sm:$0xff]  }
  0x9f   :  { %1404 = vmatpush1.bf16.msra.mxu0 %v1990_v53  ;;  %v2035_v53 = vld [vmem:[#allocation7 + $0x1e8] ss:$12 sps:$4 sm:$0xff]  }
  0xa0   :  { %1405 = vmatprep.subr.bf16.mxu0 %v1995_v54  ;;  %1445 = vmatpush1.bf16.msra.mxu1 %v2044_v22  ;;  %v2039_v54 = vld [vmem:[#allocation7 + $0x1d0] ss:$12 sps:$4 sm:$0xff]   ;;  %v2065_v22 = vld [vmem:[#allocation7 + $0x20] ss:$12 sps:$4 sm:$0xff]  }
  0xa1   :  { %1446 = vmatprep.subr.bf16.mxu1 %v2050_v23  ;;  %v2066_v23 = vld [vmem:[#allocation7 + $0xc8] ss:$12 sps:$4 sm:$0xff]  }
  0xa3   :  { %1406 = vmatpush1.bf16.msra.mxu0 %v1993_v55  ;;  %v209_v55 = vsub.s32 2, %v2215_v28 }
  0xa4   :  { %1407 = vmatprep.subr.bf16.mxu0 %v1998_v56  ;;  %1447 = vmatpush1.bf16.msra.mxu1 %v2048_v24  ;;  %v2043_v56 = vld [vmem:[#allocation7 + $0x1b8] ss:$12 sps:$4 sm:$0xff]   ;;  %v2067_v24 = vld [vmem:[#allocation7 + $0x8] ss:$12 sps:$4 sm:$0xff]  }
  0xa5   :  { %1784 = vmatprep.subr.bf16.mxu1 %v2052_v25 }
  0xa7   :  { %1408 = vmatpush2.bf16.msra.mxu0 %v1996_v57 }
  0xa8   :  { %1409 = vmatprep.subr.bf16.mxu0 %v2001_v58 }
  0xab   :  { %1410 = vmatpush2.bf16.msra.mxu0 %v1999_v59  ;;  %v210_v59 = vrot.slane %v197_v30, %v209_v55 }
  0xac   :  { %1411 = vmatprep.subr.bf16.mxu0 %v2004_v60  ;;  %v2047_v60 = vld [vmem:[#allocation7 + $0x1a0] ss:$12 sps:$4 sm:$0xff]  }
  0xaf   :  { %1412 = vmatpush2.bf16.msra.mxu0 %v2002_v61 }
  0xb0   :  { %1413 = vmatprep.subr.bf16.mxu0 %v2007_v62 }
  0xb3   :  { %1414 = vmatpush2.bf16.msra.mxu0 %v2005_v63 }
  0xb4   :  { %1415 = vmatprep.subr.bf16.mxu0 %v2010_v0 }
  0xb7   :  { %1416 = vmatpush2.bf16.msra.mxu0 %v2008_v3 }
  0xb8   :  { %1417 = vmatprep.subr.bf16.mxu0 %v2013_v6 }
  0xbb   :  { %1418 = vmatpush2.bf16.msra.mxu0 %v2011_v7 }
  0xbc   :  { %1419 = vmatprep.subr.bf16.mxu0 %v2016_v10 }
  0xbf   :  { %1420 = vmatpush2.bf16.msra.mxu0 %v2014_v11  ;;  %v2054_v11 = vld [vmem:[#allocation7 + $0x158] ss:$12 sps:$4 sm:$0xff]  }
  0xc0   :  { %1421 = vmatprep.subr.bf16.mxu0 %v2019_v14  ;;  %v2057_v14 = vld [vmem:[#allocation7 + $0x80] ss:$12 sps:$4 sm:$0xff]  }
  0xc3   :  { %1422 = vmatpush2.bf16.msra.mxu0 %v2017_v15  ;;  %v2058_v15 = vld [vmem:[#allocation7 + $0x128] ss:$12 sps:$4 sm:$0xff]  }
  0xc4   :  { %1815 = vmatprep.subr.bf16.mxu0 %v2159_v18 }
 0x126   :  { %v760_v34 = vpop.f32.mrf.mxu0 }
 0x127   :  { %v801_v35 = vpop.f32.mrf.mxu1  ;;  %v761_v36 = vadd.f32 %v760_v34, %v202_v32  ;;  %v990_v32 = vld [vmem:[%s2257_s4] sm:$0x7]  ;;  %s2162_s4 = smov [#allocation8]  }
 0x128   :  { %v762_v37 = vpop.f32.mrf.mxu0  ;;  %v999_v34 = vrot.slane %v990_v32, %v205_v31  ;;  %s1562_s10 = sshll.u32 %s2162_s4, 4  ;;  %s1563_s10 = int_to_ptr.vmem [resolvable:$true] %s1562_s10 }
 0x129   :  { %v803_v38 = vpop.f32.mrf.mxu1  ;;  %v802_v39 = vadd.f32 %v801_v35, %v761_v36  ;;  %v763_v40 = vadd.f32 %v762_v37, %v206_v33  ;;  %v995_v33 = vrot.slane %v990_v32, %v201_v29  ;;  %v1003_v29 = vrot.slane %v990_v32, %v209_v55  ;;  %s2128_s11 = scalar_lea.vmem %s1563_s10, 384  ;;  %p2133_p2 = scmp.lt.s32.totalorder %s1563_s10, %s1563_s10 }
 0x12a   :  { %v764_v41 = vpop.f32.mrf.mxu0  ;;  %p2129_p1 = scmp.ne.s32.totalorder %s1563_s10, %s2128_s11  ;;  %p2134_p3 = scmp.lt.s32.totalorder %s2128_s11, %s2128_s11 }
 0x12b   :  { %v805_v42 = vpop.f32.mrf.mxu1  ;;  %v804_v43 = vadd.f32 %v803_v38, %v763_v40  ;;  %v888_v44 = vmax.f32 %v802_v39, 0.0 }
 0x12c   :  { %v765_v45 = vpop.f32.mrf.mxu0  ;;  %p2135_p4 = por %p2134_p3, %p2133_p2 }
 0x12d   :  { %v806_v46 = vpop.f32.mrf.mxu1  ;;  %v889_v47 = vmax.f32 %v804_v43, 0.0  ;;  %v2226_v50 = vpack.c.bf16 %v888_v44, %v888_v44 }
 0x12e   :  { %p2136_p5 = pnand %p2135_p4, %p2129_p1 }
 0x12f   :  { %v892_v48 = vpack.c.bf16 %v889_v47, %v889_v47 }
 0x131   :  { %1423 = vmatprep.mubr.bf16.mxu0 %v892_v48 }
 0x132   :  { %1424 = vmatmul.mubr.bf16.vlgmr.msra.gmra.mxu0 %v2226_v50 }
 0x133   :  { %1816 = vmatpush3.bf16.msra.mxu0 %v2023_v49  ;;  %1831 = vmatprep.mubr.msk.bf16.mxu0 %vm2161_vm0, %v2159_v18 }
 0x134   :  { %1817 = vmatprep.subr.bf16.mxu0 %v2159_v18 }
 0x137   :  { %1818 = vmatpush3.bf16.msra.mxu0 %v2027_v51 }
 0x138   :  { %1819 = vmatprep.subr.bf16.mxu0 %v2159_v18 }
 0x13b   :  { %1820 = vmatpush3.bf16.msra.mxu0 %v2031_v52 }
 0x13c   :  { %1821 = vmatprep.subr.bf16.mxu0 %v2159_v18 }
 0x13f   :  { %1822 = vmatpush3.bf16.msra.mxu0 %v2035_v53 }
 0x140   :  { %1823 = vmatprep.subr.bf16.mxu0 %v2159_v18 }
 0x143   :  { %1824 = vmatpush3.bf16.msra.mxu0 %v2039_v54 }
 0x144   :  { %1825 = vmatprep.subr.bf16.mxu0 %v2159_v18 }
 0x146   :  { %v1756_v57 = vpop.f32.mrf.mxu0 }
 0x147   :  { %v1778_v58 = vpop.f32.mrf.mxu1  ;;  %1826 = vmatpush3.bf16.msra.mxu0 %v2043_v56 }
 0x148   :  { %v1757_v61 = vpop.f32.mrf.mxu0  ;;  %1827 = vmatprep.subr.bf16.mxu0 %v2159_v18 }
 0x149   :  { %v1779_v62 = vpop.f32.mrf.mxu1  ;;  %v1758_v63 = vadd.f32 %v1757_v61, %v1756_v57 }
 0x14a   :  { %v1759_v0 = vpop.f32.mrf.mxu0  ;;  %v1780_v3 = vadd.f32 %v1779_v62, %v1778_v58 }
 0x14b   :  { %v1781_v1 = vpop.f32.mrf.mxu1  ;;  %v843_v2 = vadd.f32 %v1758_v63, %v210_v59  ;;  %1828 = vmatpush3.bf16.msra.mxu0 %v2047_v60 }
 0x14c   :  { %v1760_v5 = vpop.f32.mrf.mxu0  ;;  %1829 = vmatprep.subr.bf16.mxu0 %v2159_v18  ;;  %v2061_v18 = vld [vmem:[#allocation7 + $0x50] ss:$12 sps:$4 sm:$0xff]  }
 0x14d   :  { %v1782_v6 = vpop.f32.mrf.mxu1  ;;  %v883_v7 = vadd.f32 %v1780_v3, %v843_v2 }
 0x14f   :  { %v890_v8 = vmax.f32 %v883_v7, 0.0  ;;  %1830 = vmatpush3.bf16.msra.mxu0 %v2051_v4 }
 0x151   :  { %v893_v10 = vpack.c.bf16 %v890_v8, %v890_v8 }
 0x153   :  { %1465 = vmatmul.mubr.bf16.vlgmr.msra.gmra.mxu1 %v893_v10  ;;  %1832 = vmatmul.mubr.bf16.vlgmr.msra.gmra.mxu0 %v893_v10 }
 0x154   :  { %1785 = vmatpush3.bf16.msra.mxu1 %v2053_v9  ;;  %1505 = vmatprep.mubr.bf16.mxu1 %v892_v48 }
 0x155   :  { %1786 = vmatprep.subr.bf16.mxu1 %v2054_v11 }
 0x158   :  { %1787 = vmatpush3.bf16.msra.mxu1 %v2055_v12 }
 0x159   :  { %1788 = vmatprep.subr.bf16.mxu1 %v2056_v13 }
 0x15c   :  { %1789 = vmatpush3.bf16.msra.mxu1 %v2057_v14 }
 0x15d   :  { %1790 = vmatprep.subr.bf16.mxu1 %v2058_v15 }
 0x160   :  { %1791 = vmatpush3.bf16.msra.mxu1 %v2059_v16 }
 0x161   :  { %1792 = vmatprep.subr.bf16.mxu1 %v2060_v17 }
 0x164   :  { %1793 = vmatpush3.bf16.msra.mxu1 %v2061_v18 }
 0x165   :  { %1794 = vmatprep.subr.bf16.mxu1 %v2062_v19 }
 0x168   :  { %1795 = vmatpush3.bf16.msra.mxu1 %v2063_v20 }
 0x169   :  { %1796 = vmatprep.subr.bf16.mxu1 %v2064_v21 }
 0x16c   :  { %1797 = vmatpush3.bf16.msra.mxu1 %v2065_v22 }
 0x16d   :  { %1798 = vmatprep.subr.bf16.mxu1 %v2066_v23 }
 0x170   :  { %1799 = vmatpush3.bf16.msra.mxu1 %v2067_v24 }
 0x173   :  { %1506 = vmatmul.mubr.bf16.vlgmr.msra.gmra.mxu1 %v2226_v50 }
 0x1f2   :  { %v1425_v25 = vpop.f32.mrf.mxu0 }
 0x1f3   :  { %v1426_v35 = vadd.f32 %v1425_v25, %v995_v33 }
 0x1f4   :  { %v1427_v26 = vpop.f32.mrf.mxu0 }
 0x1f5   :  { %v1428_v38 = vadd.f32 %v1427_v26, %v999_v34 }
 0x1f6   :  { %v1429_v27 = vpop.f32.mrf.mxu0 }
 0x1f8   :  { %v1430_v30 = vpop.f32.mrf.mxu0 }
 0x213   :  { %v1466_v36 = vpop.f32.mrf.mxu1  ;;  %v1547_v37 = vpop.f32.mrf.mxu0 }
 0x214   :  { %v1467_v39 = vadd.f32 %v1466_v36, %v1426_v35 }
 0x215   :  { %v1468_v40 = vpop.f32.mrf.mxu1  ;;  %v1833_v41 = vpop.f32.mrf.mxu0 }
 0x216   :  { %1553 = vst [vmem:[#allocation8] sm:$0xff] %v1467_v39  ;;  %v1469_v42 = vadd.f32 %v1468_v40, %v1428_v38 }
 0x217   :  { %v1470_v43 = vpop.f32.mrf.mxu1  ;;  %v1550_v44 = vpop.f32.mrf.mxu0 }
 0x218   :  { %1554 = vst [vmem:[#allocation8 + $0x8] sm:$0xff] %v1469_v42 }
 0x219   :  { %v1471_v45 = vpop.f32.mrf.mxu1  ;;  %v1834_v46 = vpop.f32.mrf.mxu0 }
 0x233   :  { %v1800_v47 = vpop.f32.mrf.mxu1 }
 0x235   :  { %v1801_v48 = vpop.f32.mrf.mxu1 }
 0x236   :  { %v1802_v31 = vadd.f32 %v1801_v48, %v1800_v47 }
 0x237   :  { %v1803_v49 = vpop.f32.mrf.mxu1 }
 0x238   :  { %v1508_v50 = vadd.f32 %v1802_v31, %v1003_v29 }
 0x239   :  { %v1804_v51 = vpop.f32.mrf.mxu1 }
 0x23a   :  { %v1548_v52 = vadd.f32 %v1547_v37, %v1508_v50 }
 0x23c   :  { %1555 = vst [vmem:[#allocation8 + $0x10] sm:$0xff] %v1548_v52 }
 0x23d   :  { %2139 = shalt.err (!%p2136_p5)
}
 0x23e   :  { %1565 = dma.vmem_to_hbm [thread:$0]  %s1563_s10, 384, %s2258_s5, [#allocation4]  }
 0x23f   :  { %2152 = dma.done.wait [#allocation4], 384  }
 0x240   :  { %2153 = vsyncadd [#allocation4], 4294966912 }
 0x241   :  { %1569 = vsyncpa [#allocation3], 1 }
 0x242   :  { %1570 = vsyncpa [#allocation6], 1 }
 0x243   :  { %1571 = vsyncpa [#allocation4], 1 }

</bundles_post_ra>
